<compile_context>
chip_gen: v6e
topology: v6e:2x2x1
jax: 0.10.0
libtpu: 0.0.40
codegen_flags: <defaults>
</compile_context>

<pallas_src>
import functools
import math

import jax
import jax.numpy as jnp
from jax import lax
from jax.experimental import pallas as pl
from jax.experimental.pallas import tpu as pltpu

_PAIR_LANES = 128                 # complex samples per row of the interleaved view
_ROW_LANES = 2 * _PAIR_LANES      # 256 float32 lanes per row (re/im interleaved)
_DEFAULT_BLOCK_ROWS = 512         # rows per grid step -> 512*256*4 B = 512 KiB / stream
_TWO_PI = 2.0 * math.pi


@functools.lru_cache(maxsize=None)
def _roll_matches_jnp_roll() -> bool:
    """True iff pltpu.roll(x, s, axis)[l] == x[(l - s) % L] (jnp.roll convention).

    One trivial kernel launch, cached for the process lifetime.
    """

    def probe(x_ref, o_ref):
        o_ref[...] = pltpu.roll(x_ref[...], shift=1, axis=1)

    x = jnp.broadcast_to(jnp.arange(128, dtype=jnp.float32), (8, 128))
    out = pl.pallas_call(
        probe, out_shape=jax.ShapeDtypeStruct((8, 128), jnp.float32)
    )(x)
    return bool(out[0, 0] == 127.0)


def _freq_shift_kernel(blk_ref, row_ref, lane_ref, x_ref, o_ref, *,
                       shift_next, shift_prev):
    """Shift one (BLOCK_ROWS, 256) interleaved-IQ float32 tile.

    blk_ref  : SMEM (num_blocks, 2)  [cos, sin] of the per-block base phase.
    row_ref  : VMEM (BLOCK_ROWS, 2)  [cos, sin] of the in-block row phase.
    lane_ref : VMEM (4, 256) rows: pair-cos (dup), pair-sin (dup),
               mask(-1 on real lanes, 0 on imag), mask(0 on real, +1 on imag).
    x_ref/o_ref : VMEM (BLOCK_ROWS, 256) interleaved re/im float32.
    """
    i = pl.program_id(0)

    # Per-block base phasor (two SMEM scalar reads).
    cb = blk_ref[i, 0]
    sb = blk_ref[i, 1]

    # Per-row phasor rotated by the block base phase (angle addition), (BR, 1).
    rc = row_ref[:, 0:1]
    rs = row_ref[:, 1:2]
    crow = cb * rc - sb * rs
    srow = sb * rc + cb * rs

    # Per-lane-pair phasor, already duplicated on (re, im) lane pairs, (1, 256).
    lc = lane_ref[0:1, :]
    ls = lane_ref[1:2, :]
    m_real_neg = lane_ref[2:3, :]   # -1 on real (even) lanes, 0 on imag lanes
    m_imag_pos = lane_ref[3:4, :]   # 0 on real lanes, +1 on imag (odd) lanes

    # Full cos/sin(theta_n), duplicated on each (re, im) pair, (BR, 256).
    c = crow * lc - srow * ls
    s = srow * lc + crow * ls

    x = x_ref[...]
    # Partner value of each lane (re <-> im within a pair), with the sign of
    # the sin term folded in: real lanes get -imag, imag lanes get +real.
    x_next = pltpu.roll(x, shift=shift_next, axis=1)   # lane l -> x[l + 1]
    x_prev = pltpu.roll(x, shift=shift_prev, axis=1)   # lane l -> x[l - 1]
    x_swap = x_next * m_real_neg + x_prev * m_imag_pos

    # (xr + j*xi) * (c + j*s), written back interleaved.
    o_ref[...] = x * c + x_swap * s


def _phasor_from_cycles(cycles):
    """cos/sin of 2*pi*cycles with cycles reduced mod 1 (keeps f32 phase bounded)."""
    frac = cycles - jnp.floor(cycles)
    ang = jnp.float32(_TWO_PI) * frac
    return jnp.cos(ang), jnp.sin(ang)


def apply_frequency_shift_interleaved(x_iq, freq_hz, sample_rate, *,
                                      block_rows=_DEFAULT_BLOCK_ROWS):
    """Frequency-shift an interleaved-IQ float32 signal (fast path, no repacking).

    x_iq: float32 array with 2*N elements laid out [re0, im0, re1, im1, ...]
          (any shape; it is flattened).  Returns the same shape.
    """
    orig_shape = x_iq.shape
    flat = x_iq.reshape(-1)
    if flat.dtype != jnp.float32:
        raise ValueError(f"expected float32 interleaved IQ, got {flat.dtype}")
    if flat.shape[0] % (8 * _ROW_LANES) != 0:
        raise ValueError("signal length (complex samples) must be a multiple of 1024")

    rows = flat.shape[0] // _ROW_LANES            # = N / 128
    br = max(8, (min(block_rows, rows) // 8) * 8)
    while rows % br:
        br -= 8
    num_blocks = rows // br

    freq = jnp.asarray(freq_hz, dtype=jnp.float32)
    cyc = freq / jnp.float32(sample_rate)         # cycles advanced per sample

    # theta(n) = 2*pi*cyc*n with n = (block*br + row)*128 + pair, split into
    # three independently mod-2*pi-reduced parts -> three tiny phasor tables.
    pair = jnp.arange(_PAIR_LANES, dtype=jnp.float32)
    lane_c, lane_s = _phasor_from_cycles(cyc * pair)
    lane_tab = jnp.stack([
        jnp.repeat(lane_c, 2),
        jnp.repeat(lane_s, 2),
        jnp.tile(jnp.array([-1.0, 0.0], jnp.float32), _PAIR_LANES),
        jnp.tile(jnp.array([0.0, 1.0], jnp.float32), _PAIR_LANES),
    ])                                                            # (4, 256)

    row = jnp.arange(br, dtype=jnp.float32)
    row_c, row_s = _phasor_from_cycles(cyc * (jnp.float32(_PAIR_LANES) * row))
    row_tab = jnp.stack([row_c, row_s], axis=-1)                  # (br, 2)

    blk = jnp.arange(num_blocks, dtype=jnp.float32)
    blk_c, blk_s = _phasor_from_cycles(cyc * (jnp.float32(br * _PAIR_LANES) * blk))
    blk_tab = jnp.stack([blk_c, blk_s], axis=-1)                  # (num_blocks, 2)

    x2d = flat.reshape(rows, _ROW_LANES)

    if _roll_matches_jnp_roll():
        shift_next, shift_prev = _ROW_LANES - 1, 1    # roll(L-1) == roll(-1)
    else:
        shift_next, shift_prev = 1, _ROW_LANES - 1

    kernel = functools.partial(_freq_shift_kernel,
                               shift_next=shift_next, shift_prev=shift_prev)

    main_bytes = 2 * rows * _ROW_LANES * 4
    cost = pl.CostEstimate(
        flops=12 * rows * _ROW_LANES,
        transcendentals=0,
        bytes_accessed=main_bytes + 4 * (lane_tab.size + row_tab.size + blk_tab.size),
    )

    out2d = pl.pallas_call(
        kernel,
        out_shape=jax.ShapeDtypeStruct((rows, _ROW_LANES), jnp.float32),
        grid_spec=pltpu.PrefetchScalarGridSpec(
            num_scalar_prefetch=0,
            grid=(num_blocks,),
            in_specs=[
                pl.BlockSpec(memory_space=pltpu.SMEM),              # blk_tab
                pl.BlockSpec((br, 2), lambda i: (0, 0)),            # row_tab (resident)
                pl.BlockSpec((4, _ROW_LANES), lambda i: (0, 0)),    # lane_tab (resident)
                pl.BlockSpec((br, _ROW_LANES), lambda i: (i, 0)),   # signal tile
            ],
            out_specs=pl.BlockSpec((br, _ROW_LANES), lambda i: (i, 0)),
        ),
        compiler_params=pltpu.CompilerParams(
            dimension_semantics=("parallel",),
            vmem_limit_bytes=32 * 1024 * 1024,
        ),
        cost_estimate=cost,
    )(blk_tab, row_tab, lane_tab, x2d)

    return out2d.reshape(orig_shape)


def _complex_to_interleaved(x):
    """complex64 (N,) -> float32 (N, 2).  Zero-copy bitcast when XLA allows it."""
    try:
        return lax.bitcast_convert_type(x, jnp.float32)
    except Exception:
        # TODO(synk): XLA BitcastConvert rejects complex operands on this jax
        # version; this fallback costs one fused deinterleave pass over HBM.
        return jnp.stack([jnp.real(x), jnp.imag(x)], axis=-1)


def _interleaved_to_complex(y):
    """float32 (N, 2) -> complex64 (N,).  Zero-copy bitcast when XLA allows it."""
    try:
        return lax.bitcast_convert_type(y, jnp.complex64)
    except Exception:
        return lax.complex(y[..., 0], y[..., 1])


def apply_frequency_shift(x, freq_offset, sample_rate, key=None, *,
                          block_rows=_DEFAULT_BLOCK_ROWS):
    """Pallas equivalent of ApplyFrequencyShift.forward for a 1D complex64 x."""
    if x.ndim != 1 or x.dtype != jnp.complex64:
        raise ValueError(
            f"expects a 1D complex64 input, got shape={x.shape}, dtype={x.dtype}")
    if isinstance(freq_offset, (int, float)):
        min_f = max_f = float(freq_offset)
    else:
        min_f, max_f = float(freq_offset[0]), float(freq_offset[1])
    if sample_rate <= 0:
        raise ValueError("sample_rate must be positive")

    if min_f == max_f:
        f = jnp.float32(min_f)
    else:
        # The torch module draws from its global RNG; JAX needs an explicit key.
        if key is None:
            raise ValueError(
                "a jax.random key is required when freq_offset is a (min, max) range")
        r = jax.random.uniform(key, (), dtype=jnp.float32)
        f = jnp.float32(min_f) + jnp.float32(max_f - min_f) * r

    x_iq = _complex_to_interleaved(x)                            # (N, 2) float32
    y_iq = apply_frequency_shift_interleaved(
        x_iq, f, float(sample_rate), block_rows=block_rows)
    return _interleaved_to_complex(y_iq)


if __name__ == "__main__":
    import numpy as np

    key = jax.random.PRNGKey(0)
    k_r, k_i, k_f = jax.random.split(key, 3)

    N = 1 << 18                   # 262144 complex samples -> 4 grid steps of 512 rows
    sample_rate = 16000.0
    freq_offset = 1000.0          # fixed-frequency path (min_f == max_f)

    xr = jax.random.normal(k_r, (N,), dtype=jnp.float32)
    xi = jax.random.normal(k_i, (N,), dtype=jnp.float32)
    x = lax.complex(xr, xi)       # 1D complex64

    out = apply_frequency_shift(x, freq_offset, sample_rate)
    out = jax.block_until_ready(out)
    assert out.shape == x.shape and out.dtype == jnp.complex64

    # Reference: float64 ground truth of the module's math.
    n = np.arange(N, dtype=np.float64)
    ang = 2.0 * np.pi * float(freq_offset) * n / float(sample_rate)
    ref = np.asarray(x).astype(np.complex128) * np.exp(1j * ang)
    err = float(np.max(np.abs(np.asarray(out).astype(np.complex128) - ref)))
    assert err < 5e-3, f"max abs error vs reference: {err}"

    # Random-frequency path: a pure phase rotation must preserve magnitudes.
    out_rand = apply_frequency_shift(x, (-2000.0, 2000.0), sample_rate, key=k_f)
    out_rand = jax.block_until_ready(out_rand)
    mag_err = float(jnp.max(jnp.abs(jnp.abs(out_rand) - jnp.abs(x))))
    assert mag_err < 1e-3, f"magnitude not preserved: {mag_err}"

    print("KERNEL_OK")
</pallas_src>

<mosaic_0001>
module attributes {stable_mosaic.version = 11 : i64} {
  func.func @probe(%arg0: memref<8x128xf32, #tpu.memory_space<vmem>>, %arg1: memref<8x128xf32, #tpu.memory_space<vmem>>) attributes {dimension_semantics = [], scalar_prefetch = 0 : i64, scratch_operands = 0 : i64, tpu.core_type = #tpu.core_type<tc>} {
    %c0 = arith.constant 0 : index
    %c0_0 = arith.constant 0 : index
    %0 = vector.load %arg0[%c0, %c0_0] : memref<8x128xf32, #tpu.memory_space<vmem>>, vector<8x128xf32>
    %c1_i32 = arith.constant 1 : i32
    %1 = tpu.dynamic_rotate %0 by %c1_i32 dim 1 : vector<8x128xf32>, i32 -> vector<8x128xf32>
    %c0_1 = arith.constant 0 : index
    %c0_2 = arith.constant 0 : index
    %2 = vector.load %arg1[%c0_1, %c0_2] : memref<8x128xf32, #tpu.memory_space<vmem>>, vector<8x128xf32>
    tpu.vector_store %arg1[%c0_1, %c0_2], %1 {strides = array<i32>} : memref<8x128xf32, #tpu.memory_space<vmem>>, vector<8x128xf32>,
    return
  }
}

</mosaic_0001>

<bundles_post_ra>
// kernel: tpu_custom_call.1
= control target key start
LH: loop header
LB: loop body
LE: loop exit
PB: predicated region body
PF: predicated region fallthrough
CT: control target
= control target key end

     0   :  { %6 = vsyncpa [#allocation3], 0  ;;  %s106_s0 = inlined_call_operand.hbm [shape: f32[8,128], index: 0, kind: input, shape index: {}]   ;;  %s107_s1 = inlined_call_operand.hbm [shape: f32[8,128], index: 1, kind: output, shape index: {}]  }
   0x1   :  { %7 = vsyncpa [#allocation4], 0  ;;  %s87_s6 = smov [#allocation2]  }
   0x2   :  { %s14_s7 = sshll.u32 %s87_s6, 4  ;;  %s15_s7 = int_to_ptr.vmem [resolvable:$true] %s14_s7 }
   0x3   :  { %s51_s8 = scalar_lea.vmem %s15_s7, 128  ;;  %p56_p1 = scmp.lt.s32.totalorder %s15_s7, %s15_s7 }
   0x4   :  { %p52_p0 = scmp.ne.s32.totalorder %s15_s7, %s51_s8  ;;  %p57_p2 = scmp.lt.s32.totalorder %s51_s8, %s51_s8 }
   0x6   :  { %p58_p3 = por %p57_p2, %p56_p1 }
   0x8   :  { %p59_p4 = pnand %p58_p3, %p52_p0 }
   0xa   :  { %62 = shalt.err (!%p59_p4)
}
   0xb   :  { %17 = dma.hbm_to_vmem [thread:$0]  %s106_s0, 128, %s15_s7, [#allocation3]  }
   0xc   :  { %83 = dma.done.wait [#allocation3], 128  }
   0xd   :  { %84 = vsyncadd [#allocation3], 4294967168  ;;  %v21_v0 = vld [vmem:[#allocation2] sm:$0xff]  ;;  %s88_s11 = smov 1   ;;  %s89_s12 = smov [#allocation5]  }
   0xe   :  { %22 = vrot.lane.b32.xlu0 %v21_v0, %s88_s11  ;;  %s31_s13 = sshll.u32 %s89_s12, 4  ;;  %s32_s13 = int_to_ptr.vmem [resolvable:$true] %s31_s13 }
   0xf   :  { %s63_s14 = scalar_lea.vmem %s32_s13, 128  ;;  %p68_p6 = scmp.lt.s32.totalorder %s32_s13, %s32_s13 }
  0x10   :  { %p64_p5 = scmp.ne.s32.totalorder %s32_s13, %s63_s14  ;;  %p69_p7 = scmp.lt.s32.totalorder %s63_s14, %s63_s14 }
  0x12   :  { %p70_p8 = por %p69_p7, %p68_p6 }
  0x14   :  { %p71_p9 = pnand %p70_p8, %p64_p5 }
  0x80   :  { %v23_v1 = vpop.permute.xlu0 %22 }
  0x81   :  { %24 = vst [vmem:[#allocation5] sm:$0xff] %v23_v1 }
  0x82   :  { %74 = shalt.err (!%p71_p9)
}
  0x83   :  { %34 = dma.vmem_to_hbm [thread:$0]  %s32_s13, 128, %s107_s1, [#allocation4]  }
  0x84   :  { %85 = dma.done.wait [#allocation4], 128  }
  0x85   :  { %86 = vsyncadd [#allocation4], 4294967168 }
  0x86   :  { %38 = vsyncpa [#allocation3], 1 }
  0x87   :  { %39 = vsyncpa [#allocation4], 1 }

</bundles_post_ra>
